<compile_context>
chip_gen: v7x
topology: tpu7x:2x2x1
jax: 0.10.0
libtpu: 0.0.40
codegen_flags: <defaults>
</compile_context>

<pallas_src>
import functools

import jax
import jax.numpy as jnp
from jax import lax
from jax.experimental import pallas as pl
from jax.experimental.pallas import tpu as pltpu

LANE = 128                             # TPU lane width
_STREAM_MAX_ROW_BYTES = 16 * 1024      # rows at most this wide -> stream them
_STREAM_TARGET_BLOCK_BYTES = 512 * 1024
_GATHER_TILE_B = 256                   # rows per grid step (gather path)
_GATHER_N_BUF = 4                      # manual DMA pipeline depth


def _round_up(x, m):
    return pl.cdiv(x, m) * m


def _write_lane_major(col_vec, out_ref):
    """Store a (R, 1) f32 column vector into the lane-dense (1, R) out_ref.

    Sublane -> lane movement is done 128 rows at a time with an
    iota/select/sublane-reduce (plain VPU/XLU ops, no relayout).
    """
    rows = col_vec.shape[0]
    ri = lax.broadcasted_iota(jnp.int32, (LANE, LANE), 0)
    ci = lax.broadcasted_iota(jnp.int32, (LANE, LANE), 1)
    eye = ri == ci
    for k in range(rows // LANE):
        chunk = col_vec[k * LANE:(k + 1) * LANE, :]          # (128, 1) f32
        out_ref[:, k * LANE:(k + 1) * LANE] = jnp.sum(
            jnp.where(eye, chunk, 0.0), axis=0, keepdims=True)


# --------------------------------------------------------------------------
# Path 1: small vocab -> stream full rows through auto-pipelined blocks.
# --------------------------------------------------------------------------
def _stream_kernel(cost_ref, idx_ref, mask_ref, out_ref):
    c = cost_ref[...]                                        # (TILE, Dp)
    tb, dp = c.shape
    col = lax.broadcasted_iota(jnp.int32, (tb, dp), 1)
    # NaN/-inf safe select in the native dtype; zeros keep the sum exact.
    sel = jnp.where(col == idx_ref[...], c, jnp.zeros((), c.dtype))
    picked = jnp.sum(sel, axis=1, keepdims=True).astype(jnp.float32)
    loss = (-picked) * mask_ref[...]                         # (TILE, 1) f32
    _write_lane_major(loss, out_ref)


def _masked_nll_stream(cost, idx, msk):
    B, D = cost.shape
    Dp = _round_up(D, LANE)
    itemsize = jnp.dtype(cost.dtype).itemsize

    # Pick the row-tile so one cost block is ~0.5 MiB (multiple of 128 rows,
    # capped at 512 rows and at the padded batch size).
    tile = (_STREAM_TARGET_BLOCK_BYTES // (Dp * itemsize)) // LANE * LANE
    tile = max(LANE, min(tile, 4 * LANE))
    tile = min(tile, _round_up(B, LANE))
    Bp = _round_up(B, tile)

    if Bp != B or Dp != D:
        cost = jnp.pad(cost, ((0, Bp - B), (0, Dp - D)))
    if Bp != B:
        idx = jnp.pad(idx, (0, Bp - B))
        msk = jnp.pad(msk, (0, Bp - B))
    num_tiles = Bp // tile

    out = pl.pallas_call(
        _stream_kernel,
        out_shape=jax.ShapeDtypeStruct((num_tiles, 1, tile), jnp.float32),
        grid_spec=pltpu.PrefetchScalarGridSpec(
            num_scalar_prefetch=0,
            grid=(num_tiles,),
            in_specs=[
                pl.BlockSpec((tile, Dp), lambda i: (i, 0)),   # cost rows
                pl.BlockSpec((tile, 1), lambda i: (i, 0)),    # target index
                pl.BlockSpec((tile, 1), lambda i: (i, 0)),    # mask (f32)
            ],
            out_specs=pl.BlockSpec((None, 1, tile), lambda i: (i, 0, 0)),
        ),
        compiler_params=pltpu.CompilerParams(
            dimension_semantics=("parallel",)),
    )(cost, idx.reshape(Bp, 1), msk.reshape(Bp, 1))
    return out.reshape(Bp)[:B]


# --------------------------------------------------------------------------
# Path 2: large vocab -> per-row 128-lane chunk gather with a manual,
# 4-deep, issue-before-wait DMA pipeline.
# --------------------------------------------------------------------------
def _gather_kernel(col_blk_ref, cost_hbm, lane_ref, mask_ref, out_ref,
                   gbuf, sem, *, n_rows, tile_b, n_buf, num_tiles):
    i = pl.program_id(0)

    def issue(tile, slot):
        base = tile * tile_b

        @pl.loop(0, tile_b)
        def _(r):
            row = jnp.minimum(base + r, n_rows - 1)   # clamp padded rows
            blk = col_blk_ref[base + r]
            pltpu.make_async_copy(
                cost_hbm.at[row, blk], gbuf.at[slot, r], sem.at[slot]).start()

    # Prime the pipeline with the first n_buf - 1 tiles.
    @pl.when(i == 0)
    def _():
        for t in range(min(n_buf - 1, num_tiles)):
            issue(t, t)

    # Issue tile i + n_buf - 1 BEFORE waiting on tile i (latency hiding, and
    # the SMEM scalar reads stay ahead of the waits).
    @pl.when(i + (n_buf - 1) < num_tiles)
    def _():
        issue(i + (n_buf - 1), (i + (n_buf - 1)) % n_buf)

    slot = i % n_buf
    base_i = i * tile_b

    # Wait for this tile's gathers: rebuild the real (row, chunk) descriptor
    # for each row; all rows of a slot share one DMA semaphore.
    @pl.loop(0, tile_b)
    def _(r):
        row = jnp.minimum(base_i + r, n_rows - 1)
        blk = col_blk_ref[base_i + r]
        pltpu.make_async_copy(
            cost_hbm.at[row, blk], gbuf.at[slot, r], sem.at[slot]).wait()

    g = gbuf[slot]                                           # (tile_b, LANE)
    col = lax.broadcasted_iota(jnp.int32, (tile_b, LANE), 1)
    sel = jnp.where(col == lane_ref[...], g, jnp.zeros((), g.dtype))
    picked = jnp.sum(sel, axis=1, keepdims=True).astype(jnp.float32)
    loss = (-picked) * mask_ref[...]                         # (tile_b, 1) f32
    _write_lane_major(loss, out_ref)


def _masked_nll_gather(cost, idx, msk):
    B, D = cost.shape
    Dp = _round_up(D, LANE)
    if Dp != D:
        cost = jnp.pad(cost, ((0, 0), (0, Dp - D)))
    cost3 = cost.reshape(B, Dp // LANE, LANE)                # (B, chunks, 128)

    tile_b = _GATHER_TILE_B
    n_buf = _GATHER_N_BUF
    Bp = _round_up(B, tile_b)

    # Memory-safety clamp for out-of-range targets (torch would raise).
    idx = jnp.clip(idx, 0, D - 1)
    if Bp != B:
        idx = jnp.pad(idx, (0, Bp - B))
        msk = jnp.pad(msk, (0, Bp - B))

    col_blk = (idx // LANE).astype(jnp.int32)                # SMEM (prefetch)
    lane_in = (idx % LANE).astype(jnp.int32).reshape(Bp, 1)  # VMEM
    mask2d = msk.reshape(Bp, 1)                              # VMEM (f32)
    num_tiles = Bp // tile_b

    kernel = functools.partial(
        _gather_kernel, n_rows=B, tile_b=tile_b, n_buf=n_buf,
        num_tiles=num_tiles)

    out = pl.pallas_call(
        kernel,
        out_shape=jax.ShapeDtypeStruct((num_tiles, 1, tile_b), jnp.float32),
        grid_spec=pltpu.PrefetchScalarGridSpec(
            num_scalar_prefetch=1,                           # col_blk
            grid=(num_tiles,),
            in_specs=[
                pl.BlockSpec(memory_space=pl.ANY),                   # cost3
                pl.BlockSpec((tile_b, 1), lambda i, blks: (i, 0)),   # lane
                pl.BlockSpec((tile_b, 1), lambda i, blks: (i, 0)),   # mask
            ],
            out_specs=pl.BlockSpec((None, 1, tile_b),
                                   lambda i, blks: (i, 0, 0)),
            scratch_shapes=[
                pltpu.VMEM((n_buf, tile_b, LANE), cost.dtype),
                pltpu.SemaphoreType.DMA((n_buf,)),
            ],
        ),
        # Cross-step manual DMA pipelining carries state -> "arbitrary".
        compiler_params=pltpu.CompilerParams(
            dimension_semantics=("arbitrary",)),
    )(col_blk, cost3, lane_in, mask2d)
    return out.reshape(Bp)[:B]


@jax.jit
def masked_nll_loss(cost, inputs, mask):
    """Pallas TPU implementation of masked_NLLLoss.forward (returns f32)."""
    _, D = cost.shape
    idx = inputs.astype(jnp.int32)
    msk = mask.astype(jnp.float32)      # keep mask precision (review note)
    Dp = _round_up(D, LANE)
    if Dp * jnp.dtype(cost.dtype).itemsize <= _STREAM_MAX_ROW_BYTES:
        return _masked_nll_stream(cost, idx, msk)
    return _masked_nll_gather(cost, idx, msk)


if __name__ == "__main__":
    key = jax.random.PRNGKey(0)
    k1, k2, k3, k4, k5, k6 = jax.random.split(key, 6)

    # Case 1: small vocab -> streaming path.
    B, D = 16, 256
    cost = jax.nn.log_softmax(
        jax.random.normal(k1, (B, D), dtype=jnp.float32), axis=-1)
    inputs = jax.random.randint(k2, (B,), 0, D, dtype=jnp.int32)
    mask = (jax.random.uniform(k3, (B,)) > 0.3).astype(jnp.float32)

    loss = jax.block_until_ready(masked_nll_loss(cost, inputs, mask))
    ref = -cost[jnp.arange(B), inputs] * mask
    assert loss.shape == (B,)
    assert jnp.allclose(loss, ref, atol=1e-6, rtol=1e-6), (loss, ref)

    # Case 2: large vocab -> manual-DMA gather path (exercises priming,
    # steady-state issue-before-wait, tail tiles and row clamping).
    B2, D2 = 1100, 8192
    cost2 = jax.nn.log_softmax(
        jax.random.normal(k4, (B2, D2), dtype=jnp.float32), axis=-1)
    inputs2 = jax.random.randint(k5, (B2,), 0, D2, dtype=jnp.int32)
    mask2 = (jax.random.uniform(k6, (B2,)) > 0.3).astype(jnp.float32)

    loss2 = jax.block_until_ready(masked_nll_loss(cost2, inputs2, mask2))
    ref2 = -cost2[jnp.arange(B2), inputs2] * mask2
    assert loss2.shape == (B2,)
    assert jnp.allclose(loss2, ref2, atol=1e-6, rtol=1e-6)

    print("KERNEL_OK")
</pallas_src>

<mosaic_0001>
module attributes {stable_mosaic.version = 11 : i64} {
  func.func @_stream_kernel(%arg0: i32, %arg1: memref<128x256xf32, #tpu.memory_space<vmem>>, %arg2: memref<128x1xi32, #tpu.memory_space<vmem>>, %arg3: memref<128x1xf32, #tpu.memory_space<vmem>>, %arg4: memref<1x1x128xf32, #tpu.memory_space<vmem>>) attributes {dimension_semantics = [#tpu.dimension_semantics<parallel>], iteration_bounds = array<i64: 1>, scalar_prefetch = 0 : i64, scratch_operands = 0 : i64, tpu.core_type = #tpu.core_type<tc>, window_params = [{transform_indices = @transform_0, window_bounds = array<i64: 128, 256>}, {transform_indices = @transform_1, window_bounds = array<i64: 128, 1>}, {transform_indices = @transform_2, window_bounds = array<i64: 128, 1>}, {transform_indices = @transform_3, window_bounds = array<i64: 1, 1, 128>}]} {
    %c0 = arith.constant 0 : index
    %c0_0 = arith.constant 0 : index
    %0 = vector.load %arg1[%c0, %c0_0] : memref<128x256xf32, #tpu.memory_space<vmem>>, vector<128x256xf32>
    %1 = tpu.iota {dimensions = array<i32: 1>} : vector<128x256xi32>
    %c0_1 = arith.constant 0 : index
    %c0_2 = arith.constant 0 : index
    %2 = vector.load %arg2[%c0_1, %c0_2] : memref<128x1xi32, #tpu.memory_space<vmem>>, vector<128x1xi32>
    %3 = vector.broadcast %2 : vector<128x1xi32> to vector<128x256xi32>
    %4 = arith.cmpi eq, %1, %3 : vector<128x256xi32>
    %cst = arith.constant 0.000000e+00 : f32
    %5 = vector.broadcast %cst : f32 to vector<128x256xf32>
    %6 = arith.select %4, %0, %5 : vector<128x256xi1>, vector<128x256xf32>
    %cst_3 = arith.constant dense<0.000000e+00> : vector<128xf32>
    %7 = vector.multi_reduction <add>, %6, %cst_3 [1] : vector<128x256xf32> to vector<128xf32>
    %8 = vector.shape_cast %7 : vector<128xf32> to vector<128x1xf32>
    %cst_4 = arith.constant 0.000000e+00 : f32
    %9 = vector.broadcast %cst_4 : f32 to vector<128x1xf32>
    %10 = arith.subf %9, %8 : vector<128x1xf32>
    %c0_5 = arith.constant 0 : index
    %c0_6 = arith.constant 0 : index
    %11 = vector.load %arg3[%c0_5, %c0_6] : memref<128x1xf32, #tpu.memory_space<vmem>>, vector<128x1xf32>
    %12 = arith.mulf %10, %11 : vector<128x1xf32>
    %13 = tpu.iota {dimensions = array<i32: 0>} : vector<128x128xi32>
    %14 = tpu.iota {dimensions = array<i32: 1>} : vector<128x128xi32>
    %15 = arith.cmpi eq, %13, %14 : vector<128x128xi32>
    %cst_7 = arith.constant 0.000000e+00 : f32
    %16 = vector.shape_cast %12 : vector<128x1xf32> to vector<128x1xf32>
    %17 = vector.broadcast %16 : vector<128x1xf32> to vector<128x128xf32>
    %18 = vector.broadcast %cst_7 : f32 to vector<128x128xf32>
    %19 = arith.select %15, %17, %18 : vector<128x128xi1>, vector<128x128xf32>
    %cst_8 = arith.constant dense<0.000000e+00> : vector<128xf32>
    %20 = vector.multi_reduction <add>, %19, %cst_8 [0] : vector<128x128xf32> to vector<128xf32>
    %21 = vector.shape_cast %20 : vector<128xf32> to vector<1x128xf32>
    %c0_9 = arith.constant 0 : index
    %c0_10 = arith.constant 0 : index
    %c0_11 = arith.constant 0 : index
    %22 = vector.load %arg4[%c0_9, %c0_10, %c0_11] : memref<1x1x128xf32, #tpu.memory_space<vmem>>, vector<1x1x128xf32>
    %23 = vector.shape_cast %22 : vector<1x1x128xf32> to vector<1x128xf32>
    %24 = vector.shape_cast %21 : vector<1x128xf32> to vector<1x1x128xf32>
    tpu.vector_store %arg4[%c0_9, %c0_10, %c0_11], %24 {strides = array<i32>} : memref<1x1x128xf32, #tpu.memory_space<vmem>>, vector<1x1x128xf32>,
    return
  }
  func.func @transform_0(%arg0: i32) -> (i32, i32) {
    %c0_i32 = arith.constant 0 : i32
    %c0_i32_0 = arith.constant 0 : i32
    return %arg0, %c0_i32 : i32, i32
  }
  func.func @transform_1(%arg0: i32) -> (i32, i32) {
    %c0_i32 = arith.constant 0 : i32
    %c0_i32_0 = arith.constant 0 : i32
    return %arg0, %c0_i32 : i32, i32
  }
  func.func @transform_2(%arg0: i32) -> (i32, i32) {
    %c0_i32 = arith.constant 0 : i32
    %c0_i32_0 = arith.constant 0 : i32
    return %arg0, %c0_i32 : i32, i32
  }
  func.func @transform_3(%arg0: i32) -> (i32, i32, i32) {
    %c0_i32 = arith.constant 0 : i32
    %c0_i32_0 = arith.constant 0 : i32
    %c0_i32_1 = arith.constant 0 : i32
    return %arg0, %c0_i32, %c0_i32_0 : i32, i32, i32
  }
}

</mosaic_0001>

<bundles_post_ra>
// kernel: masked_nll_loss.1
= control target key start
LH: loop header
LB: loop body
LE: loop exit
PB: predicated region body
PF: predicated region fallthrough
CT: control target
= control target key end

     0   :  { %v431_v0 = vmov 0   ;;  %v46_v17 = vlaneseq  ;;  %s740_s1 = inlined_call_operand.vmem [shape: s32[128,1], index: 1, kind: input, shape index: {}]   ;;  %s741_s0 = inlined_call_operand.vmem [shape: f32[128,256], index: 0, kind: input, shape index: {}]   ;;  %s742_s2 = inlined_call_operand.vmem [shape: f32[128,1], index: 2, kind: input, shape index: {}]   ;;  %s743_s3 = inlined_call_operand.vmem [shape: f32[1,1,128], index: 3, kind: output, shape index: {}]  }
   0x1   :  { %430 = vset.pattern.permute.xlu1 %v431_v0  ;;  %429 = vset.pattern.permute.xlu0 %v431_v0  ;;  %v51_v1 = vld [vmem:[%s740_s1 + $0x10] sm:$0xff]  ;;  %v49_v2 = vld [vmem:[%s740_s1] sm:$0xff]  ;;  %v52_v3 = vld [vmem:[%s740_s1 + $0x18] sm:$0xff] }
   0x2   :  { %72 = vperm.xlu1 %430, %v51_v1   ;;  %66 = vperm.xlu0 %429, %v49_v2   ;;  %v50_v4 = vld [vmem:[%s740_s1 + $0x8] sm:$0xff]  ;;  %v53_v6 = vld [vmem:[%s740_s1 + $0x20] sm:$0xff]  ;;  %v56_v7 = vld [vmem:[%s740_s1 + $0x38] sm:$0xff]  ;;  %v501_v18 = vand.u32 127, %v46_v17 }
   0x3   :  { %v54_v5 = vld [vmem:[%s740_s1 + $0x28] sm:$0xff]  ;;  %v55_v8 = vld [vmem:[%s740_s1 + $0x30] sm:$0xff]  ;;  %v57_v10 = vld [vmem:[%s740_s1 + $0x40] sm:$0xff] }
   0x4   :  { %v58_v9 = vld [vmem:[%s740_s1 + $0x48] sm:$0xff]  ;;  %v60_v11 = vld [vmem:[%s740_s1 + $0x58] sm:$0xff]  ;;  %v59_v12 = vld [vmem:[%s740_s1 + $0x50] sm:$0xff]  ;;  %v504_v19 = vadd.s32 128, %v501_v18 }
   0x5   :  { %v62_v13 = vld [vmem:[%s740_s1 + $0x68] sm:$0xff]  ;;  %v61_v14 = vld [vmem:[%s740_s1 + $0x60] sm:$0xff]  ;;  %v64_v15 = vld [vmem:[%s740_s1 + $0x78] sm:$0xff] }
   0x6   :  { %75 = vperm.xlu1 %430, %v52_v3   ;;  %69 = vperm.xlu0 %429, %v50_v4   ;;  %v63_v16 = vld [vmem:[%s740_s1 + $0x70] sm:$0xff]  ;;  %v14_v20 = vld [vmem:[%s741_s0] sm:$0xff]  ;;  %v15_v21 = vld [vmem:[%s741_s0 + $0x8] sm:$0xff] }
   0x7   :  { %v18_v22 = vld [vmem:[%s741_s0 + $0x20] sm:$0xff]  ;;  %v19_v23 = vld [vmem:[%s741_s0 + $0x28] sm:$0xff]  ;;  %v16_v31 = vld [vmem:[%s741_s0 + $0x10] sm:$0xff] }
   0x8   :  { %v17_v32 = vld [vmem:[%s741_s0 + $0x18] sm:$0xff]  ;;  %v20_v38 = vld [vmem:[%s741_s0 + $0x30] sm:$0xff]  ;;  %v22_v41 = vld [vmem:[%s741_s0 + $0x40] sm:$0xff] }
   0x9   :  { %v21_v39 = vld [vmem:[%s741_s0 + $0x38] sm:$0xff]  ;;  %v23_v42 = vld [vmem:[%s741_s0 + $0x48] sm:$0xff]  ;;  %v24_v49 = vld [vmem:[%s741_s0 + $0x50] sm:$0xff] }
   0xa   :  { %81 = vperm.xlu1 %430, %v54_v5   ;;  %78 = vperm.xlu0 %429, %v53_v6   ;;  %v25_v50 = vld [vmem:[%s741_s0 + $0x58] sm:$0xff]  ;;  %v26_v52 = vld [vmem:[%s741_s0 + $0x60] sm:$0xff]  ;;  %v27_v53 = vld [vmem:[%s741_s0 + $0x68] sm:$0xff] }
   0xb   :  { %v28_v61 = vld [vmem:[%s741_s0 + $0x70] sm:$0xff]  ;;  %v29_v62 = vld [vmem:[%s741_s0 + $0x78] sm:$0xff]  ;;  %v30_v0 = vld [vmem:[%s741_s0 + $0x80] sm:$0xff] }
   0xc   :  { %v31_v1 = vld [vmem:[%s741_s0 + $0x88] sm:$0xff] }
   0xe   :  { %87 = vperm.xlu1 %430, %v56_v7   ;;  %84 = vperm.xlu0 %429, %v55_v8  }
  0x12   :  { %93 = vperm.xlu1 %430, %v58_v9   ;;  %90 = vperm.xlu0 %429, %v57_v10   ;;  %v32_v9 = vld [vmem:[%s741_s0 + $0x90] sm:$0xff]  ;;  %v33_v10 = vld [vmem:[%s741_s0 + $0x98] sm:$0xff] }
  0x16   :  { %99 = vperm.xlu1 %430, %v60_v11   ;;  %96 = vperm.xlu0 %429, %v59_v12   ;;  %v34_v12 = vld [vmem:[%s741_s0 + $0xa0] sm:$0xff] }
  0x1a   :  { %105 = vperm.xlu1 %430, %v62_v13   ;;  %102 = vperm.xlu0 %429, %v61_v14   ;;  %v35_v13 = vld [vmem:[%s741_s0 + $0xa8] sm:$0xff] }
  0x1e   :  { %111 = vperm.xlu1 %430, %v64_v15   ;;  %108 = vperm.xlu0 %429, %v63_v16  }
  0x81   :  { %v73_v24 = vpop.permute.xlu1 %72  ;;  %v67_v25 = vpop.permute.xlu0 %66 }
  0x82   :  { %vm117_vm0 = vcmp.eq.s32.totalorder %v501_v18, %v73_v24  ;;  %vm118_vm1 = vcmp.eq.s32.totalorder %v504_v19, %v73_v24  ;;  %vm113_vm2 = vcmp.eq.s32.totalorder %v501_v18, %v67_v25  ;;  %vm114_vm3 = vcmp.eq.s32.totalorder %v504_v19, %v67_v25  ;;  %v36_v24 = vld [vmem:[%s741_s0 + $0xb0] sm:$0xff]  ;;  %v37_v25 = vld [vmem:[%s741_s0 + $0xb8] sm:$0xff] }
  0x83   :  { %v145_v26 = vsel %vm113_vm2, %v14_v20, 0.0  ;;  %v146_v27 = vsel %vm114_vm3, %v15_v21, 0.0  ;;  %v149_v28 = vsel %vm117_vm0, %v18_v22, 0.0  ;;  %v150_v29 = vsel %vm118_vm1, %v19_v23, 0.0 }
  0x84   :  { %v177_v30 = vadd.f32 %v146_v27, %v145_v26  ;;  %v183_v35 = vadd.f32 %v150_v29, %v149_v28  ;;  %v38_v27 = vld [vmem:[%s741_s0 + $0xc0] sm:$0xff]  ;;  %v39_v28 = vld [vmem:[%s741_s0 + $0xc8] sm:$0xff] }
  0x85   :  { %v76_v33 = vpop.permute.xlu1 %75  ;;  %v70_v34 = vpop.permute.xlu0 %69 }
  0x86   :  { %vm115_vm4 = vcmp.eq.s32.totalorder %v501_v18, %v70_v34  ;;  %vm116_vm5 = vcmp.eq.s32.totalorder %v504_v19, %v70_v34  ;;  %178 = vadd.xlane.f32.xlu0 %v177_v30  ;;  %vm119_vm6 = vcmp.eq.s32.totalorder %v501_v18, %v76_v33  ;;  %vm120_vm7 = vcmp.eq.s32.totalorder %v504_v19, %v76_v33 }
  0x87   :  { %v147_v36 = vsel %vm115_vm4, %v16_v31, 0.0  ;;  %v148_v37 = vsel %vm116_vm5, %v17_v32, 0.0  ;;  %v151_v45 = vsel %vm119_vm6, %v20_v38, 0.0  ;;  %v152_v46 = vsel %vm120_vm7, %v21_v39, 0.0  ;;  %v42_v39 = vld [vmem:[%s741_s0 + $0xe0] sm:$0xff] }
  0x88   :  { %v180_v40 = vadd.f32 %v148_v37, %v147_v36  ;;  %v186_v56 = vadd.f32 %v152_v46, %v151_v45  ;;  %v40_v36 = vld [vmem:[%s741_s0 + $0xd0] sm:$0xff]  ;;  %v41_v37 = vld [vmem:[%s741_s0 + $0xd8] sm:$0xff] }
  0x89   :  { %v82_v43 = vpop.permute.xlu1 %81  ;;  %v79_v44 = vpop.permute.xlu0 %78 }
  0x8a   :  { %vm121_vm8 = vcmp.eq.s32.totalorder %v501_v18, %v79_v44  ;;  %vm122_vm9 = vcmp.eq.s32.totalorder %v504_v19, %v79_v44  ;;  %181 = vadd.xlane.f32.xlu1 %v180_v40  ;;  %vm123_vm10 = vcmp.eq.s32.totalorder %v501_v18, %v82_v43  ;;  %vm124_vm11 = vcmp.eq.s32.totalorder %v504_v19, %v82_v43  ;;  %v43_v40 = vld [vmem:[%s741_s0 + $0xe8] sm:$0xff] }
  0x8b   :  { %184 = vadd.xlane.f32.xlu0 %v183_v35  ;;  %v153_v47 = vsel %vm121_vm8, %v22_v41, 0.0  ;;  %v154_v48 = vsel %vm122_vm9, %v23_v42, 0.0  ;;  %v155_v57 = vsel %vm123_vm10, %v24_v49, 0.0  ;;  %v156_v58 = vsel %vm124_vm11, %v25_v50, 0.0  ;;  %v45_v49 = vld [vmem:[%s741_s0 + $0xf8] sm:$0xff] }
  0x8c   :  { %v189_v51 = vadd.f32 %v154_v48, %v153_v47  ;;  %v192_v4 = vadd.f32 %v156_v58, %v155_v57  ;;  %v44_v48 = vld [vmem:[%s741_s0 + $0xf0] sm:$0xff]  ;;  %v242_v58 = vld [vmem:[%s742_s2 + $0x8] sm:$0xff] }
  0x8d   :  { %v88_v54 = vpop.permute.xlu1 %87  ;;  %v85_v55 = vpop.permute.xlu0 %84 }
  0x8e   :  { %vm125_vm12 = vcmp.eq.s32.totalorder %v501_v18, %v85_v55  ;;  %vm126_vm13 = vcmp.eq.s32.totalorder %v504_v19, %v85_v55  ;;  %190 = vadd.xlane.f32.xlu1 %v189_v51  ;;  %vm127_vm14 = vcmp.eq.s32.totalorder %v501_v18, %v88_v54  ;;  %vm128_vm15 = vcmp.eq.s32.totalorder %v504_v19, %v88_v54 }
  0x8f   :  { %187 = vadd.xlane.f32.xlu0 %v186_v56  ;;  %v157_v59 = vsel %vm125_vm12, %v26_v52, 0.0  ;;  %v158_v60 = vsel %vm126_vm13, %v27_v53, 0.0  ;;  %v159_v5 = vsel %vm127_vm14, %v28_v61, 0.0  ;;  %v160_v6 = vsel %vm128_vm15, %v29_v62, 0.0  ;;  %v243_v61 = vld [vmem:[%s742_s2 + $0x10] sm:$0xff] }
  0x90   :  { %v195_v63 = vadd.f32 %v158_v60, %v157_v59  ;;  %v198_v16 = vadd.f32 %v160_v6, %v159_v5  ;;  %v244_v5 = vld [vmem:[%s742_s2 + $0x18] sm:$0xff] }
  0x91   :  { %v94_v2 = vpop.permute.xlu1 %93  ;;  %v91_v3 = vpop.permute.xlu0 %90 }
  0x92   :  { %vm129_vm0 = vcmp.eq.s32.totalorder %v501_v18, %v91_v3  ;;  %vm130_vm1 = vcmp.eq.s32.totalorder %v504_v19, %v91_v3  ;;  %196 = vadd.xlane.f32.xlu1 %v195_v63  ;;  %vm131_vm2 = vcmp.eq.s32.totalorder %v501_v18, %v94_v2  ;;  %vm132_vm3 = vcmp.eq.s32.totalorder %v504_v19, %v94_v2  ;;  %v245_v2 = vld [vmem:[%s742_s2 + $0x20] sm:$0xff] }
  0x93   :  { %193 = vadd.xlane.f32.xlu0 %v192_v4  ;;  %v161_v7 = vsel %vm129_vm0, %v30_v0, 0.0  ;;  %v162_v8 = vsel %vm130_vm1, %v31_v1, 0.0  ;;  %v163_v20 = vsel %vm131_vm2, %v32_v9, 0.0  ;;  %v164_v21 = vsel %vm132_vm3, %v33_v10, 0.0  ;;  %v247_v10 = vld [vmem:[%s742_s2 + $0x30] sm:$0xff] }
  0x94   :  { %v201_v11 = vadd.f32 %v162_v8, %v161_v7  ;;  %v204_v31 = vadd.f32 %v164_v21, %v163_v20  ;;  %v249_v21 = vld [vmem:[%s742_s2 + $0x40] sm:$0xff] }
  0x95   :  { %v100_v14 = vpop.permute.xlu1 %99  ;;  %v97_v15 = vpop.permute.xlu0 %96 }
  0x96   :  { %vm133_vm4 = vcmp.eq.s32.totalorder %v501_v18, %v97_v15  ;;  %vm134_vm5 = vcmp.eq.s32.totalorder %v504_v19, %v97_v15  ;;  %202 = vadd.xlane.f32.xlu1 %v201_v11  ;;  %vm135_vm6 = vcmp.eq.s32.totalorder %v501_v18, %v100_v14  ;;  %vm136_vm7 = vcmp.eq.s32.totalorder %v504_v19, %v100_v14 }
  0x97   :  { %199 = vadd.xlane.f32.xlu0 %v198_v16  ;;  %v165_v22 = vsel %vm133_vm4, %v34_v12, 0.0  ;;  %v166_v23 = vsel %vm134_vm5, %v35_v13, 0.0  ;;  %v167_v32 = vsel %vm135_vm6, %v36_v24, 0.0  ;;  %v168_v33 = vsel %vm136_vm7, %v37_v25, 0.0  ;;  %v246_v13 = vld [vmem:[%s742_s2 + $0x28] sm:$0xff]  ;;  %v248_v24 = vld [vmem:[%s742_s2 + $0x38] sm:$0xff] }
  0x98   :  { %v207_v26 = vadd.f32 %v166_v23, %v165_v22  ;;  %v210_v43 = vadd.f32 %v168_v33, %v167_v32  ;;  %v250_v32 = vld [vmem:[%s742_s2 + $0x48] sm:$0xff] }
  0x99   :  { %v106_v29 = vpop.permute.xlu1 %105  ;;  %v103_v30 = vpop.permute.xlu0 %102 }
  0x9a   :  { %vm137_vm8 = vcmp.eq.s32.totalorder %v501_v18, %v103_v30  ;;  %vm138_vm9 = vcmp.eq.s32.totalorder %v504_v19, %v103_v30  ;;  %208 = vadd.xlane.f32.xlu1 %v207_v26  ;;  %vm139_vm10 = vcmp.eq.s32.totalorder %v501_v18, %v106_v29  ;;  %vm140_vm11 = vcmp.eq.s32.totalorder %v504_v19, %v106_v29  ;;  %v251_v29 = vld [vmem:[%s742_s2 + $0x50] sm:$0xff] }
  0x9b   :  { %205 = vadd.xlane.f32.xlu0 %v204_v31  ;;  %v169_v34 = vsel %vm137_vm8, %v38_v27, 0.0  ;;  %v170_v35 = vsel %vm138_vm9, %v39_v28, 0.0  ;;  %v171_v44 = vsel %vm139_vm10, %v40_v36, 0.0  ;;  %v172_v45 = vsel %vm140_vm11, %v41_v37, 0.0  ;;  %v253_v37 = vld [vmem:[%s742_s2 + $0x60] sm:$0xff] }
  0x9c   :  { %v213_v38 = vadd.f32 %v170_v35, %v169_v34  ;;  %v216_v51 = vadd.f32 %v172_v45, %v171_v44  ;;  %v255_v45 = vld [vmem:[%s742_s2 + $0x70] sm:$0xff] }
  0x9d   :  { %v112_v41 = vpop.permute.xlu1 %111  ;;  %v109_v42 = vpop.permute.xlu0 %108 }
  0x9e   :  { %vm141_vm12 = vcmp.eq.s32.totalorder %v501_v18, %v109_v42  ;;  %vm142_vm13 = vcmp.eq.s32.totalorder %v504_v19, %v109_v42  ;;  %214 = vadd.xlane.f32.xlu1 %v213_v38  ;;  %vm143_vm14 = vcmp.eq.s32.totalorder %v501_v18, %v112_v41  ;;  %vm144_vm15 = vcmp.eq.s32.totalorder %v504_v19, %v112_v41  ;;  %v241_v19 = vld [vmem:[%s742_s2] sm:$0xff] }
  0x9f   :  { %211 = vadd.xlane.f32.xlu0 %v210_v43  ;;  %v173_v46 = vsel %vm141_vm12, %v42_v39, 0.0  ;;  %v174_v47 = vsel %vm142_vm13, %v43_v40, 0.0  ;;  %v175_v52 = vsel %vm143_vm14, %v44_v48, 0.0  ;;  %v176_v53 = vsel %vm144_vm15, %v45_v49, 0.0  ;;  %v252_v40 = vld [vmem:[%s742_s2 + $0x58] sm:$0xff]  ;;  %v254_v48 = vld [vmem:[%s742_s2 + $0x68] sm:$0xff] }
  0xa0   :  { %v219_v50 = vadd.f32 %v174_v47, %v173_v46  ;;  %v222_v54 = vadd.f32 %v176_v53, %v175_v52  ;;  %v256_v53 = vld [vmem:[%s742_s2 + $0x78] sm:$0xff] }
  0xa2   :  { %220 = vadd.xlane.f32.xlu1 %v219_v50 }
  0xa3   :  { %217 = vadd.xlane.f32.xlu0 %v216_v51 }
  0xa7   :  { %223 = vadd.xlane.f32.xlu0 %v222_v54 }
 0x113   :  { %v179_v55 = vpop.xlane.xlu0 %178 }
 0x114   :  { %v225_v56 = vsub.f32 0.0, %v179_v55 }
 0x116   :  { %v257_v57 = vmul.f32 %v241_v19, %v225_v56  ;;  %v703_v56 = vshrl.u32 %v46_v17, 7 }
 0x117   :  { %v182_v59 = vpop.xlane.xlu1 %181 }
 0x118   :  { %v226_v60 = vsub.f32 0.0, %v182_v59  ;;  %v185_v62 = vpop.xlane.xlu0 %184  ;;  %308 = vperm.xlu1 %430, %v257_v57   ;;  %v275_v57 = vadd.s32 8, %v703_v56  ;;  %v276_v59 = vadd.s32 16, %v703_v56  ;;  %vm290_vm0 = vcmp.eq.s32.totalorder %v703_v56, %v501_v18 }
 0x119   :  { %v227_v63 = vsub.f32 0.0, %v185_v62  ;;  %v278_v17 = vadd.s32 32, %v703_v56 }
 0x11a   :  { %v258_v0 = vmul.f32 %v242_v58, %v226_v60  ;;  %vm291_vm1 = vcmp.eq.s32.totalorder %v275_v57, %v501_v18  ;;  %v277_v60 = vadd.s32 24, %v703_v56  ;;  %vm292_vm2 = vcmp.eq.s32.totalorder %v276_v59, %v501_v18 }
 0x11b   :  { %v259_v1 = vmul.f32 %v243_v61, %v227_v63  ;;  %v191_v3 = vpop.xlane.xlu1 %190  ;;  %vm294_vm4 = vcmp.eq.s32.totalorder %v278_v17, %v501_v18 }
 0x11c   :  { %v229_v4 = vsub.f32 0.0, %v191_v3  ;;  %v188_v6 = vpop.xlane.xlu0 %187  ;;  %313 = vperm.xlu0 %429, %v258_v0   ;;  %vm293_vm3 = vcmp.eq.s32.totalorder %v277_v60, %v501_v18  ;;  %v279_v3 = vadd.s32 40, %v703_v56 }
 0x11d   :  { %v228_v7 = vsub.f32 0.0, %v188_v6  ;;  %318 = vperm.xlu1 %430, %v259_v1  }
 0x11e   :  { %v261_v8 = vmul.f32 %v245_v2, %v229_v4  ;;  %vm295_vm5 = vcmp.eq.s32.totalorder %v279_v3, %v501_v18 }
 0x11f   :  { %v260_v9 = vmul.f32 %v244_v5, %v228_v7  ;;  %v197_v11 = vpop.xlane.xlu1 %196  ;;  %v280_v7 = vadd.s32 48, %v703_v56 }
 0x120   :  { %v231_v12 = vsub.f32 0.0, %v197_v11  ;;  %v194_v14 = vpop.xlane.xlu0 %193  ;;  %328 = vperm.xlu0 %429, %v261_v8  }
 0x121   :  { %v230_v15 = vsub.f32 0.0, %v194_v14  ;;  %323 = vperm.xlu1 %430, %v260_v9   ;;  %vm296_vm6 = vcmp.eq.s32.totalorder %v280_v7, %v501_v18 }
 0x122   :  { %v263_v16 = vmul.f32 %v247_v10, %v231_v12  ;;  %v281_v10 = vadd.s32 56, %v703_v56 }
 0x123   :  { %v262_v20 = vmul.f32 %v246_v13, %v230_v15  ;;  %v203_v22 = vpop.xlane.xlu1 %202  ;;  %v282_v15 = vadd.s32 64, %v703_v56 }
 0x124   :  { %v233_v23 = vsub.f32 0.0, %v203_v22  ;;  %v200_v25 = vpop.xlane.xlu0 %199  ;;  %338 = vperm.xlu0 %429, %v263_v16   ;;  %vm297_vm7 = vcmp.eq.s32.totalorder %v281_v10, %v501_v18 }
 0x125   :  { %v232_v26 = vsub.f32 0.0, %v200_v25  ;;  %333 = vperm.xlu1 %430, %v262_v20   ;;  %vm298_vm8 = vcmp.eq.s32.totalorder %v282_v15, %v501_v18 }
 0x126   :  { %v265_v27 = vmul.f32 %v249_v21, %v233_v23  ;;  %v283_v21 = vadd.s32 72, %v703_v56 }
 0x127   :  { %v264_v28 = vmul.f32 %v248_v24, %v232_v26  ;;  %v209_v30 = vpop.xlane.xlu1 %208  ;;  %v284_v26 = vadd.s32 80, %v703_v56 }
 0x128   :  { %v235_v31 = vsub.f32 0.0, %v209_v30  ;;  %v206_v33 = vpop.xlane.xlu0 %205  ;;  %348 = vperm.xlu0 %429, %v265_v27   ;;  %vm299_vm9 = vcmp.eq.s32.totalorder %v283_v21, %v501_v18 }
 0x129   :  { %v234_v34 = vsub.f32 0.0, %v206_v33  ;;  %343 = vperm.xlu1 %430, %v264_v28   ;;  %vm300_vm10 = vcmp.eq.s32.totalorder %v284_v26, %v501_v18 }
 0x12a   :  { %v267_v35 = vmul.f32 %v251_v29, %v235_v31  ;;  %v285_v29 = vadd.s32 88, %v703_v56 }
 0x12b   :  { %v266_v36 = vmul.f32 %v250_v32, %v234_v34  ;;  %v215_v38 = vpop.xlane.xlu1 %214  ;;  %v286_v34 = vadd.s32 96, %v703_v56 }
 0x12c   :  { %v237_v39 = vsub.f32 0.0, %v215_v38  ;;  %v212_v41 = vpop.xlane.xlu0 %211  ;;  %358 = vperm.xlu0 %429, %v267_v35   ;;  %vm301_vm11 = vcmp.eq.s32.totalorder %v285_v29, %v501_v18 }
 0x12d   :  { %v236_v42 = vsub.f32 0.0, %v212_v41  ;;  %353 = vperm.xlu1 %430, %v266_v36   ;;  %vm302_vm12 = vcmp.eq.s32.totalorder %v286_v34, %v501_v18 }
 0x12e   :  { %v269_v43 = vmul.f32 %v253_v37, %v237_v39  ;;  %v287_v37 = vadd.s32 104, %v703_v56 }
 0x12f   :  { %v268_v44 = vmul.f32 %v252_v40, %v236_v42  ;;  %v221_v46 = vpop.xlane.xlu1 %220  ;;  %v288_v42 = vadd.s32 112, %v703_v56 }
 0x130   :  { %v239_v47 = vsub.f32 0.0, %v221_v46  ;;  %v218_v49 = vpop.xlane.xlu0 %217  ;;  %368 = vperm.xlu0 %429, %v269_v43   ;;  %vm303_vm13 = vcmp.eq.s32.totalorder %v287_v37, %v501_v18 }
 0x131   :  { %v238_v50 = vsub.f32 0.0, %v218_v49  ;;  %363 = vperm.xlu1 %430, %v268_v44   ;;  %vm304_vm14 = vcmp.eq.s32.totalorder %v288_v42, %v501_v18 }
 0x132   :  { %v271_v51 = vmul.f32 %v255_v45, %v239_v47  ;;  %v289_v45 = vadd.s32 120, %v703_v56 }
 0x133   :  { %v270_v52 = vmul.f32 %v254_v48, %v238_v50 }
 0x134   :  { %v224_v54 = vpop.xlane.xlu0 %223  ;;  %378 = vperm.xlu0 %429, %v271_v51   ;;  %vm305_vm15 = vcmp.eq.s32.totalorder %v289_v45, %v501_v18 }
 0x135   :  { %v240_v19 = vsub.f32 0.0, %v224_v54  ;;  %373 = vperm.xlu1 %430, %v270_v52  }
 0x137   :  { %v272_v55 = vmul.f32 %v256_v53, %v240_v19 }
 0x139   :  { %383 = vperm.xlu1 %430, %v272_v55  }
 0x197   :  { %v309_v58 = vpop.permute.xlu1 %308 }
 0x198   :  { %v386_v62 = vsel %vm290_vm0, %v309_v58, 0.0 }
 0x19b   :  { %v314_v61 = vpop.permute.xlu0 %313 }
 0x19c   :  { %v319_v63 = vpop.permute.xlu1 %318  ;;  %v387_v0 = vsel %vm291_vm1, %v314_v61, 0.0 }
 0x19d   :  { %v402_v1 = vadd.f32 %v387_v0, %v386_v62  ;;  %v388_v2 = vsel %vm292_vm2, %v319_v63, 0.0 }
 0x19f   :  { %v403_v4 = vadd.f32 %v402_v1, %v388_v2  ;;  %v329_v5 = vpop.permute.xlu0 %328 }
 0x1a0   :  { %v324_v6 = vpop.permute.xlu1 %323  ;;  %v390_v11 = vsel %vm294_vm4, %v329_v5, 0.0 }
 0x1a1   :  { %v389_v8 = vsel %vm293_vm3, %v324_v6, 0.0 }
 0x1a2   :  { %v404_v9 = vadd.f32 %v403_v4, %v389_v8 }
 0x1a3   :  { %v339_v12 = vpop.permute.xlu0 %338 }
 0x1a4   :  { %v405_v13 = vadd.f32 %v404_v9, %v390_v11  ;;  %v334_v14 = vpop.permute.xlu1 %333  ;;  %v392_v22 = vsel %vm296_vm6, %v339_v12, 0.0 }
 0x1a5   :  { %v391_v16 = vsel %vm295_vm5, %v334_v14, 0.0 }
 0x1a6   :  { %v406_v20 = vadd.f32 %v405_v13, %v391_v16 }
 0x1a7   :  { %v349_v23 = vpop.permute.xlu0 %348 }
 0x1a8   :  { %v407_v24 = vadd.f32 %v406_v20, %v392_v22  ;;  %v344_v25 = vpop.permute.xlu1 %343  ;;  %v394_v30 = vsel %vm298_vm8, %v349_v23, 0.0 }
 0x1a9   :  { %v393_v27 = vsel %vm297_vm7, %v344_v25, 0.0 }
 0x1aa   :  { %v408_v28 = vadd.f32 %v407_v24, %v393_v27 }
 0x1ab   :  { %v359_v31 = vpop.permute.xlu0 %358 }
 0x1ac   :  { %v409_v32 = vadd.f32 %v408_v28, %v394_v30  ;;  %v354_v33 = vpop.permute.xlu1 %353  ;;  %v396_v38 = vsel %vm300_vm10, %v359_v31, 0.0 }
 0x1ad   :  { %v395_v35 = vsel %vm299_vm9, %v354_v33, 0.0 }
 0x1ae   :  { %v410_v36 = vadd.f32 %v409_v32, %v395_v35 }
 0x1af   :  { %v369_v39 = vpop.permute.xlu0 %368 }
 0x1b0   :  { %v411_v40 = vadd.f32 %v410_v36, %v396_v38  ;;  %v364_v41 = vpop.permute.xlu1 %363  ;;  %v398_v46 = vsel %vm302_vm12, %v369_v39, 0.0 }
 0x1b1   :  { %v397_v43 = vsel %vm301_vm11, %v364_v41, 0.0 }
 0x1b2   :  { %v412_v44 = vadd.f32 %v411_v40, %v397_v43 }
 0x1b3   :  { %v379_v49 = vpop.permute.xlu0 %378 }
 0x1b4   :  { %v413_v47 = vadd.f32 %v412_v44, %v398_v46  ;;  %v374_v48 = vpop.permute.xlu1 %373  ;;  %v400_v52 = vsel %vm304_vm14, %v379_v49, 0.0 }
 0x1b5   :  { %v399_v50 = vsel %vm303_vm13, %v374_v48, 0.0 }
 0x1b6   :  { %v414_v51 = vadd.f32 %v413_v47, %v399_v50 }
 0x1b8   :  { %v415_v53 = vadd.f32 %v414_v51, %v400_v52  ;;  %v384_v54 = vpop.permute.xlu1 %383 }
 0x1b9   :  { %v401_v19 = vsel %vm305_vm15, %v384_v54, 0.0 }
 0x1ba   :  { %v416_v55 = vadd.f32 %v415_v53, %v401_v19 }
 0x1bc   :  { %v417_v57 = vrot.slane %v416_v55, 4 }
 0x1be   :  { %v418_v58 = vadd.f32 %v417_v57, %v416_v55 }
 0x1c0   :  { %v419_v59 = vrot.slane %v418_v58, 2 }
 0x1c2   :  { %v420_v60 = vadd.f32 %v419_v59, %v418_v58 }
 0x1c4   :  { %v421_v56 = vrot.slane %v420_v60, 1 }
 0x1c6   :  { %v422_v61 = vadd.f32 %v421_v56, %v420_v60 }
 0x1c8   :  { %423 = vst [vmem:[%s743_s3] sm:$0x1] %v422_v61 }

</bundles_post_ra>
